<compile_context>
chip_gen: v6e
topology: v6e:2x2x1
jax: 0.10.0
libtpu: 0.0.40
codegen_flags: <defaults>
</compile_context>

<pallas_src>
import functools

import numpy as np
import jax
import jax.numpy as jnp
from jax import lax
from jax.experimental import pallas as pl
from jax.experimental.pallas import tpu as pltpu

_NEG = -1e30  # "minus infinity" that stays NaN-free through exp/max.


def _round_up(x, m):
    return (x + m - 1) // m * m


def _argmax_last(x):
    """(R, L) -> (max (R,1) f32, first-argmax (R,1) int32) along last axis."""
    v = jnp.max(x, axis=-1, keepdims=True)
    ids = lax.broadcasted_iota(jnp.int32, x.shape, x.ndim - 1)
    idx = jnp.min(jnp.where(x == v, ids, x.shape[-1]), axis=-1, keepdims=True)
    return v, idx.astype(jnp.int32)


def _argmax_first(x):
    """(R, L) -> (max (1,L) f32, first-argmax (1,L) int32) along axis 0."""
    v = jnp.max(x, axis=0, keepdims=True)
    ids = lax.broadcasted_iota(jnp.int32, x.shape, 0)
    idx = jnp.min(jnp.where(x == v, ids, x.shape[0]), axis=0, keepdims=True)
    return v, idx.astype(jnp.int32)


def _corr_tile(a_ref, bt_ref, normalize, inv_temperature):
    """corr tile (TN, Mp) in f32 from (1,TN,C) / (1,C,Mp) VMEM blocks."""
    a = a_ref[0].astype(jnp.float32)       # (TN, C)
    bt = bt_ref[0].astype(jnp.float32)     # (C, Mp)
    if normalize:
        a = a * lax.rsqrt(jnp.maximum(jnp.sum(a * a, axis=-1, keepdims=True), 1e-12))
        bt = bt * lax.rsqrt(jnp.maximum(jnp.sum(bt * bt, axis=0, keepdims=True), 1e-12))
    # bf16 operands for the MXU, f32 accumulation.
    corr = jnp.dot(a.astype(jnp.bfloat16), bt.astype(jnp.bfloat16),
                   preferred_element_type=jnp.float32)
    return corr * jnp.float32(inv_temperature)


def _col_stats_kernel(a_ref, bt_ref, cmax_ref, csum_ref, *,
                      normalize, inv_temperature, n_valid, tile_n):
    """Pass 1: online column (dim=-2) softmax statistics across N tiles."""
    i = pl.program_id(1)
    corr = _corr_tile(a_ref, bt_ref, normalize, inv_temperature)   # (TN, Mp)
    row_ids = i * tile_n + lax.broadcasted_iota(jnp.int32, corr.shape, 0)
    corr = jnp.where(row_ids < n_valid, corr, _NEG)                # mask padded rows

    tile_max = jnp.max(corr, axis=0, keepdims=True)                # (1, Mp)

    @pl.when(i == 0)
    def _():
        cmax_ref[0] = jnp.full_like(cmax_ref[0], _NEG)
        csum_ref[0] = jnp.zeros_like(csum_ref[0])

    old_max = cmax_ref[0]
    new_max = jnp.maximum(old_max, tile_max)
    tile_sum = jnp.sum(jnp.exp(corr - new_max), axis=0, keepdims=True)
    csum_ref[0] = csum_ref[0] * jnp.exp(old_max - new_max) + tile_sum
    cmax_ref[0] = new_max


def _match_kernel(a_ref, bt_ref, cmax_ref, csum_ref,
                  rval_ref, rarg_ref, cval_ref, carg_ref, *,
                  normalize, inv_temperature, n_valid, m_valid, tile_n):
    """Pass 2: P tile (VMEM only) -> per-row and per-column argmax / max."""
    i = pl.program_id(1)
    corr = _corr_tile(a_ref, bt_ref, normalize, inv_temperature)   # (TN, Mp)
    row_ids = i * tile_n + lax.broadcasted_iota(jnp.int32, corr.shape, 0)
    col_ids = lax.broadcasted_iota(jnp.int32, corr.shape, 1)
    valid_row = row_ids < n_valid
    valid_col = col_ids < m_valid
    corr = jnp.where(valid_row & valid_col, corr, _NEG)

    # Row softmax (dim=-1) -- fully local to the tile (full M is resident).
    rmax = jnp.max(corr, axis=-1, keepdims=True)                   # (TN, 1)
    er = jnp.exp(corr - rmax)
    rinv = pl.reciprocal(jnp.sum(er, axis=-1, keepdims=True), approx=True)

    # Column softmax (dim=-2) -- global statistics from pass 1.
    ec = jnp.exp(corr - cmax_ref[0])
    cinv = pl.reciprocal(csum_ref[0], approx=True)                 # (1, Mp)

    P = (er * rinv) * (ec * cinv)                                  # (TN, Mp)

    # Per-row best match (only real columns compete).
    rv, ra = _argmax_last(jnp.where(valid_col, P, -1.0))
    rval_ref[0] = rv
    rarg_ref[0] = ra

    # Per-column best match, accumulated online across N tiles.
    cv, ca_local = _argmax_first(jnp.where(valid_row, P, -1.0))
    ca = ca_local + i * tile_n

    @pl.when(i == 0)
    def _():
        cval_ref[0] = cv
        carg_ref[0] = ca

    @pl.when(i > 0)
    def _():
        prev_v = cval_ref[0]
        prev_a = carg_ref[0]
        better = cv > prev_v
        cval_ref[0] = jnp.where(better, cv, prev_v)
        carg_ref[0] = jnp.where(better, ca, prev_a)


def _vmem_limit_bytes():
    cap = 64 * 1024 * 1024
    try:
        info = pltpu.get_tpu_info()
        cap = int(getattr(info, "vmem_capacity_bytes", cap))
    except Exception:
        pass
    return min(int(cap * 0.8), 100 * 1024 * 1024)


def _auto_tile_n(n, mp, c, vmem_limit):
    # ~8 live f32 (tile_n, Mp)-sized values + double-buffered (tile_n, C) rows.
    per_row = 8 * 4 * mp + 4 * 4 * c
    tn = (vmem_limit // 2) // per_row
    tn = int(max(8, min(512, (tn // 8) * 8)))
    return min(tn, _round_up(n, 8))


@functools.partial(jax.jit, static_argnames=("normalize", "inv_temperature", "tile_n"))
def dual_softmax_matcher_pallas(desc_A, desc_B, *, normalize=False,
                                inv_temperature=1.0, tile_n=None):
    """Tiled dual-softmax matcher.

    Returns:
      row_val (B, N) f32 : max_m P[b, n, m]
      row_arg (B, N) i32 : argmax_m P[b, n, m]
      col_val (B, M) f32 : max_n P[b, n, m]
      col_arg (B, M) i32 : argmax_n P[b, n, m]
    with P = softmax(corr, dim=-2) * softmax(corr, dim=-1) as in the torch
    reference.  The dense (B, N, M) P / mask are intentionally never written.
    """
    B, N, C = desc_A.shape
    B2, M, C2 = desc_B.shape
    assert B == B2 and C == C2

    vmem_limit = _vmem_limit_bytes()
    Mp = _round_up(M, 128)                       # lane-dense output width
    if tile_n is None:
        tile_n = _auto_tile_n(N, Mp, C, vmem_limit)
    tile_n = max(8, _round_up(int(tile_n), 8))
    Np = _round_up(N, tile_n)
    NT = Np // tile_n

    a_p = jnp.pad(desc_A, ((0, 0), (0, Np - N), (0, 0)))                    # (B, Np, C)
    bt_p = jnp.pad(jnp.swapaxes(desc_B, 1, 2), ((0, 0), (0, 0), (0, Mp - M)))  # (B, C, Mp)

    cparams = pltpu.CompilerParams(
        dimension_semantics=("parallel", "arbitrary"),
        vmem_limit_bytes=vmem_limit)
    # TODO(synk): when B == 1 the second TensorCore on v7x stays idle; splitting
    # N into an extra parallel axis would need a cross-core col-argmax merge.

    inv_t = float(inv_temperature)

    # Pass 1: column softmax statistics (resident accumulators over N tiles).
    col_max, col_sum = pl.pallas_call(
        functools.partial(_col_stats_kernel, normalize=normalize,
                          inv_temperature=inv_t, n_valid=N, tile_n=tile_n),
        out_shape=(jax.ShapeDtypeStruct((B, 1, Mp), jnp.float32),
                   jax.ShapeDtypeStruct((B, 1, Mp), jnp.float32)),
        grid=(B, NT),
        in_specs=[pl.BlockSpec((1, tile_n, C), lambda b, i: (b, i, 0)),
                  pl.BlockSpec((1, C, Mp), lambda b, i: (b, 0, 0))],
        out_specs=(pl.BlockSpec((1, 1, Mp), lambda b, i: (b, 0, 0)),
                   pl.BlockSpec((1, 1, Mp), lambda b, i: (b, 0, 0))),
        compiler_params=cparams,
    )(a_p, bt_p)

    # Pass 2: P tiles (VMEM only) -> row/column argmax + max.
    row_val, row_arg, col_val, col_arg = pl.pallas_call(
        functools.partial(_match_kernel, normalize=normalize,
                          inv_temperature=inv_t, n_valid=N, m_valid=M,
                          tile_n=tile_n),
        out_shape=(jax.ShapeDtypeStruct((B, Np, 1), jnp.float32),
                   jax.ShapeDtypeStruct((B, Np, 1), jnp.int32),
                   jax.ShapeDtypeStruct((B, 1, Mp), jnp.float32),
                   jax.ShapeDtypeStruct((B, 1, Mp), jnp.int32)),
        grid=(B, NT),
        in_specs=[pl.BlockSpec((1, tile_n, C), lambda b, i: (b, i, 0)),
                  pl.BlockSpec((1, C, Mp), lambda b, i: (b, 0, 0)),
                  pl.BlockSpec((1, 1, Mp), lambda b, i: (b, 0, 0)),
                  pl.BlockSpec((1, 1, Mp), lambda b, i: (b, 0, 0))],
        out_specs=(pl.BlockSpec((1, tile_n, 1), lambda b, i: (b, i, 0)),
                   pl.BlockSpec((1, tile_n, 1), lambda b, i: (b, i, 0)),
                   pl.BlockSpec((1, 1, Mp), lambda b, i: (b, 0, 0)),
                   pl.BlockSpec((1, 1, Mp), lambda b, i: (b, 0, 0))),
        compiler_params=cparams,
    )(a_p, bt_p, col_max, col_sum)

    return (row_val[:, :N, 0], row_arg[:, :N, 0],
            col_val[:, 0, :M], col_arg[:, 0, :M])


class DualSoftMaxMatcher:
    """JAX/Pallas port of DeDoDe's DualSoftMaxMatcher forward pass."""

    def __init__(self, normalize=False, inv_temp=1.0, threshold=0.0, tile_n=None):
        self.normalize = normalize
        self.inv_temp = inv_temp
        self.threshold = threshold
        self.tile_n = tile_n

    def __call__(self, keypoints_A, descriptions_A, keypoints_B, descriptions_B):
        row_val, row_arg, col_val, col_arg = dual_softmax_matcher_pallas(
            descriptions_A, descriptions_B,
            normalize=self.normalize,
            inv_temperature=float(self.inv_temp),
            tile_n=self.tile_n)
        B, N = row_val.shape
        # Mutual nearest neighbour + threshold == torch's
        # (P == P.max(-1)) & (P == P.max(-2)) & (P > threshold) mask.
        # TODO(synk): exact-value ties could yield several matches per row in
        # the torch.nonzero formulation; the argmax formulation keeps the first.
        mutual = jnp.take_along_axis(col_arg, row_arg, axis=1) == jnp.arange(N)[None, :]
        mask = mutual & (row_val > self.threshold)
        # TODO(synk): dynamic-size nonzero has no in-kernel Pallas equivalent;
        # it runs on the small (B, N) mask instead of the dense (B, N, M) one.
        ids = jnp.argwhere(mask)                     # (K, 2): (b, n)
        batch_ids = ids[:, 0]
        n_ids = ids[:, 1]
        m_ids = row_arg[batch_ids, n_ids]
        matches_A = keypoints_A[batch_ids, n_ids]
        matches_B = keypoints_B[batch_ids, m_ids]
        return matches_A, matches_B, batch_ids


def _reference_P(desc_A, desc_B, normalize, inv_temperature):
    """Pure-JAX reference mirroring the kernel's bf16 MXU path."""
    a = desc_A.astype(jnp.float32)
    b = desc_B.astype(jnp.float32)
    if normalize:
        a = a / jnp.maximum(jnp.linalg.norm(a, axis=-1, keepdims=True), 1e-6)
        b = b / jnp.maximum(jnp.linalg.norm(b, axis=-1, keepdims=True), 1e-6)
    corr = jnp.einsum('bnc,bmc->bnm', a.astype(jnp.bfloat16), b.astype(jnp.bfloat16),
                      preferred_element_type=jnp.float32).astype(jnp.float32)
    corr = corr * inv_temperature
    return jax.nn.softmax(corr, axis=-2) * jax.nn.softmax(corr, axis=-1)


if __name__ == "__main__":
    key = jax.random.PRNGKey(0)
    k1, k2, k3, k4 = jax.random.split(key, 4)

    # Small shapes that still exercise row padding (20 -> 24), column padding
    # (19 -> 128) and a multi-tile (3 N-tiles) two-pass column softmax.
    B, N, M, C = 2, 20, 19, 32
    TILE_N = 8
    descriptions_A = jax.random.normal(k1, (B, N, C), dtype=jnp.float32)
    descriptions_B = jax.random.normal(k2, (B, M, C), dtype=jnp.float32)
    keypoints_A = jax.random.uniform(k3, (B, N, 2), dtype=jnp.float32,
                                     minval=-1.0, maxval=1.0)
    keypoints_B = jax.random.uniform(k4, (B, M, 2), dtype=jnp.float32,
                                     minval=-1.0, maxval=1.0)

    kA_np = np.asarray(keypoints_A)
    kB_np = np.asarray(keypoints_B)

    for normalize, inv_t, thr in [(False, 1.0, 0.0), (True, 10.0, 0.01)]:
        row_val, row_arg, col_val, col_arg = dual_softmax_matcher_pallas(
            descriptions_A, descriptions_B,
            normalize=normalize, inv_temperature=inv_t, tile_n=TILE_N)
        jax.block_until_ready((row_val, row_arg, col_val, col_arg))

        P_ref = np.asarray(_reference_P(descriptions_A, descriptions_B,
                                        normalize, inv_t))

        # Softmax-product maxima must agree with the reference.
        np.testing.assert_allclose(np.asarray(row_val), P_ref.max(axis=-1),
                                   rtol=2e-2, atol=1e-6)
        np.testing.assert_allclose(np.asarray(col_val), P_ref.max(axis=-2),
                                   rtol=2e-2, atol=1e-6)

        # Full forward (match extraction glue).
        matcher = DualSoftMaxMatcher(normalize=normalize, inv_temp=inv_t,
                                     threshold=thr, tile_n=TILE_N)
        matches_A, matches_B, batch_ids = matcher(
            keypoints_A, descriptions_A, keypoints_B, descriptions_B)
        jax.block_until_ready((matches_A, matches_B, batch_ids))
        mA_np = np.asarray(matches_A)
        mB_np = np.asarray(matches_B)
        bid_np = np.asarray(batch_ids)

        # Reconstruct the (b, n, m) triples the matcher used (row-major order
        # matches jnp.argwhere / torch.nonzero ordering).
        rv = np.asarray(row_val)
        ra = np.asarray(row_arg)
        ca = np.asarray(col_arg)
        got = [(b, n, int(ra[b, n]))
               for b in range(B) for n in range(N)
               if ca[b, int(ra[b, n])] == n and rv[b, n] > thr]
        assert len(got) == mA_np.shape[0] == mB_np.shape[0] == bid_np.shape[0]

        # Every emitted match must be a (near-)mutual maximum of the reference
        # P and gather the right keypoints.
        for k, (b, n, m) in enumerate(got):
            p = P_ref[b, n, m]
            assert p >= 0.98 * P_ref[b, n, :].max(), (b, n, m)
            assert p >= 0.98 * P_ref[b, :, m].max(), (b, n, m)
            assert p >= 0.98 * thr
            assert int(bid_np[k]) == b
            np.testing.assert_allclose(mA_np[k], kA_np[b, n])
            np.testing.assert_allclose(mB_np[k], kB_np[b, m])

        # Match count must agree with the reference mutual-argmax count
        # (small slack for bf16 / approx-reciprocal near-ties).
        ref_ra = P_ref.argmax(axis=-1)
        ref_ca = P_ref.argmax(axis=-2)
        ref_cnt = sum(1 for b in range(B) for n in range(N)
                      if ref_ca[b, ref_ra[b, n]] == n
                      and P_ref[b, n, ref_ra[b, n]] > thr)
        assert abs(ref_cnt - len(got)) <= 3

    print("KERNEL_OK")
</pallas_src>

<mosaic_0001>
module attributes {stable_mosaic.version = 11 : i64} {
  func.func @_col_stats_kernel(%arg0: i32, %arg1: i32, %arg2: memref<1x8x32xf32, #tpu.memory_space<vmem>>, %arg3: memref<1x32x128xf32, #tpu.memory_space<vmem>>, %arg4: memref<1x1x128xf32, #tpu.memory_space<vmem>>, %arg5: memref<1x1x128xf32, #tpu.memory_space<vmem>>) attributes {dimension_semantics = [#tpu.dimension_semantics<parallel>, #tpu.dimension_semantics<arbitrary>], iteration_bounds = array<i64: 2, 3>, scalar_prefetch = 0 : i64, scratch_operands = 0 : i64, tpu.core_type = #tpu.core_type<tc>, window_params = [{transform_indices = @transform_0, window_bounds = array<i64: 1, 8, 32>}, {transform_indices = @transform_1, window_bounds = array<i64: 1, 32, 128>}, {transform_indices = @transform_2, window_bounds = array<i64: 1, 1, 128>}, {transform_indices = @transform_3, window_bounds = array<i64: 1, 1, 128>}]} {
    %c0 = arith.constant 0 : index
    %c0_0 = arith.constant 0 : index
    %c0_1 = arith.constant 0 : index
    %0 = vector.load %arg2[%c0, %c0_0, %c0_1] : memref<1x8x32xf32, #tpu.memory_space<vmem>>, vector<1x8x32xf32>
    %1 = vector.shape_cast %0 : vector<1x8x32xf32> to vector<8x32xf32>
    %c0_2 = arith.constant 0 : index
    %c0_3 = arith.constant 0 : index
    %c0_4 = arith.constant 0 : index
    %2 = vector.load %arg3[%c0_2, %c0_3, %c0_4] : memref<1x32x128xf32, #tpu.memory_space<vmem>>, vector<1x32x128xf32>
    %3 = vector.shape_cast %2 : vector<1x32x128xf32> to vector<32x128xf32>
    %4 = arith.truncf %1 : vector<8x32xf32> to vector<8x32xbf16>
    %5 = arith.truncf %3 : vector<32x128xf32> to vector<32x128xbf16>
    %cst = arith.constant dense<0.000000e+00> : vector<8x128xf32>
    %6 = tpu.matmul %4, %5, %cst {dimension_numbers = #tpu.dot_dimension_numbers<[1], [0], [0], [1], [0, 0, 1, 1], [], []>} : vector<8x32xbf16>, vector<32x128xbf16>, vector<8x128xf32> -> vector<8x128xf32>
    %cst_5 = arith.constant 1.000000e+00 : f32
    %7 = vector.broadcast %cst_5 : f32 to vector<8x128xf32>
    %8 = arith.mulf %6, %7 : vector<8x128xf32>
    %c8_i32 = arith.constant 8 : i32
    %9 = arith.muli %arg1, %c8_i32 : i32
    %10 = tpu.iota {dimensions = array<i32: 0>} : vector<8x128xi32>
    %11 = vector.broadcast %9 : i32 to vector<8x128xi32>
    %12 = arith.addi %11, %10 : vector<8x128xi32>
    %c20_i32 = arith.constant 20 : i32
    %13 = vector.broadcast %c20_i32 : i32 to vector<8x128xi32>
    %14 = arith.cmpi slt, %12, %13 : vector<8x128xi32>
    %cst_6 = arith.constant -1.000000e+30 : f32
    %15 = vector.broadcast %cst_6 : f32 to vector<8x128xf32>
    %16 = arith.select %14, %8, %15 : vector<8x128xi1>, vector<8x128xf32>
    %cst_7 = arith.constant dense<0xFF800000> : vector<128xf32>
    %17 = vector.multi_reduction <maximumf>, %16, %cst_7 [0] : vector<8x128xf32> to vector<128xf32>
    %18 = vector.shape_cast %17 : vector<128xf32> to vector<1x128xf32>
    %c0_i32 = arith.constant 0 : i32
    %19 = arith.cmpi eq, %arg1, %c0_i32 : i32
    %20 = arith.extui %19 : i1 to i32
    %c0_i32_8 = arith.constant 0 : i32
    %21 = arith.cmpi ne, %20, %c0_i32_8 : i32
    scf.if %21 {
      %cst_22 = arith.constant -1.000000e+30 : f32
      %42 = vector.broadcast %cst_22 : f32 to vector<1x128xf32>
      %c0_23 = arith.constant 0 : index
      %c0_24 = arith.constant 0 : index
      %c0_25 = arith.constant 0 : index
      %43 = vector.load %arg4[%c0_23, %c0_24, %c0_25] : memref<1x1x128xf32, #tpu.memory_space<vmem>>, vector<1x1x128xf32>
      %44 = vector.shape_cast %43 : vector<1x1x128xf32> to vector<1x128xf32>
      %45 = vector.shape_cast %42 : vector<1x128xf32> to vector<1x1x128xf32>
      tpu.vector_store %arg4[%c0_23, %c0_24, %c0_25], %45 {strides = array<i32>} : memref<1x1x128xf32, #tpu.memory_space<vmem>>, vector<1x1x128xf32>,
      %cst_26 = arith.constant 0.000000e+00 : f32
      %46 = vector.broadcast %cst_26 : f32 to vector<1x128xf32>
      %c0_27 = arith.constant 0 : index
      %c0_28 = arith.constant 0 : index
      %c0_29 = arith.constant 0 : index
      %47 = vector.load %arg5[%c0_27, %c0_28, %c0_29] : memref<1x1x128xf32, #tpu.memory_space<vmem>>, vector<1x1x128xf32>
      %48 = vector.shape_cast %47 : vector<1x1x128xf32> to vector<1x128xf32>
      %49 = vector.shape_cast %46 : vector<1x128xf32> to vector<1x1x128xf32>
      tpu.vector_store %arg5[%c0_27, %c0_28, %c0_29], %49 {strides = array<i32>} : memref<1x1x128xf32, #tpu.memory_space<vmem>>, vector<1x1x128xf32>,
    } else {
    }
    %c0_9 = arith.constant 0 : index
    %c0_10 = arith.constant 0 : index
    %c0_11 = arith.constant 0 : index
    %22 = vector.load %arg4[%c0_9, %c0_10, %c0_11] : memref<1x1x128xf32, #tpu.memory_space<vmem>>, vector<1x1x128xf32>
    %23 = vector.shape_cast %22 : vector<1x1x128xf32> to vector<1x128xf32>
    %24 = arith.maximumf %23, %18 : vector<1x128xf32>
    %25 = vector.broadcast %24 : vector<1x128xf32> to vector<8x128xf32>
    %26 = arith.subf %16, %25 : vector<8x128xf32>
    %27 = math.exp %26 : vector<8x128xf32>
    %cst_12 = arith.constant dense<0.000000e+00> : vector<128xf32>
    %28 = vector.multi_reduction <add>, %27, %cst_12 [0] : vector<8x128xf32> to vector<128xf32>
    %29 = vector.shape_cast %28 : vector<128xf32> to vector<1x128xf32>
    %c0_13 = arith.constant 0 : index
    %c0_14 = arith.constant 0 : index
    %c0_15 = arith.constant 0 : index
    %30 = vector.load %arg5[%c0_13, %c0_14, %c0_15] : memref<1x1x128xf32, #tpu.memory_space<vmem>>, vector<1x1x128xf32>
    %31 = vector.shape_cast %30 : vector<1x1x128xf32> to vector<1x128xf32>
    %32 = arith.subf %23, %24 : vector<1x128xf32>
    %33 = math.exp %32 : vector<1x128xf32>
    %34 = arith.mulf %31, %33 : vector<1x128xf32>
    %35 = arith.addf %34, %29 : vector<1x128xf32>
    %c0_16 = arith.constant 0 : index
    %c0_17 = arith.constant 0 : index
    %c0_18 = arith.constant 0 : index
    %36 = vector.load %arg5[%c0_16, %c0_17, %c0_18] : memref<1x1x128xf32, #tpu.memory_space<vmem>>, vector<1x1x128xf32>
    %37 = vector.shape_cast %36 : vector<1x1x128xf32> to vector<1x128xf32>
    %38 = vector.shape_cast %35 : vector<1x128xf32> to vector<1x1x128xf32>
    tpu.vector_store %arg5[%c0_16, %c0_17, %c0_18], %38 {strides = array<i32>} : memref<1x1x128xf32, #tpu.memory_space<vmem>>, vector<1x1x128xf32>,
    %c0_19 = arith.constant 0 : index
    %c0_20 = arith.constant 0 : index
    %c0_21 = arith.constant 0 : index
    %39 = vector.load %arg4[%c0_19, %c0_20, %c0_21] : memref<1x1x128xf32, #tpu.memory_space<vmem>>, vector<1x1x128xf32>
    %40 = vector.shape_cast %39 : vector<1x1x128xf32> to vector<1x128xf32>
    %41 = vector.shape_cast %24 : vector<1x128xf32> to vector<1x1x128xf32>
    tpu.vector_store %arg4[%c0_19, %c0_20, %c0_21], %41 {strides = array<i32>} : memref<1x1x128xf32, #tpu.memory_space<vmem>>, vector<1x1x128xf32>,
    return
  }
  func.func @transform_0(%arg0: i32, %arg1: i32) -> (i32, i32, i32) {
    %c0_i32 = arith.constant 0 : i32
    %c0_i32_0 = arith.constant 0 : i32
    return %arg0, %arg1, %c0_i32 : i32, i32, i32
  }
  func.func @transform_1(%arg0: i32, %arg1: i32) -> (i32, i32, i32) {
    %c0_i32 = arith.constant 0 : i32
    %c0_i32_0 = arith.constant 0 : i32
    %c0_i32_1 = arith.constant 0 : i32
    return %arg0, %c0_i32, %c0_i32_0 : i32, i32, i32
  }
  func.func @transform_2(%arg0: i32, %arg1: i32) -> (i32, i32, i32) {
    %c0_i32 = arith.constant 0 : i32
    %c0_i32_0 = arith.constant 0 : i32
    %c0_i32_1 = arith.constant 0 : i32
    return %arg0, %c0_i32, %c0_i32_0 : i32, i32, i32
  }
  func.func @transform_3(%arg0: i32, %arg1: i32) -> (i32, i32, i32) {
    %c0_i32 = arith.constant 0 : i32
    %c0_i32_0 = arith.constant 0 : i32
    %c0_i32_1 = arith.constant 0 : i32
    return %arg0, %c0_i32, %c0_i32_0 : i32, i32, i32
  }
}

module attributes {stable_mosaic.version = 11 : i64} {
  func.func @_match_kernel(%arg0: i32, %arg1: i32, %arg2: memref<1x8x32xf32, #tpu.memory_space<vmem>>, %arg3: memref<1x32x128xf32, #tpu.memory_space<vmem>>, %arg4: memref<1x1x128xf32, #tpu.memory_space<vmem>>, %arg5: memref<1x1x128xf32, #tpu.memory_space<vmem>>, %arg6: memref<1x8x1xf32, #tpu.memory_space<vmem>>, %arg7: memref<1x8x1xi32, #tpu.memory_space<vmem>>, %arg8: memref<1x1x128xf32, #tpu.memory_space<vmem>>, %arg9: memref<1x1x128xi32, #tpu.memory_space<vmem>>) attributes {dimension_semantics = [#tpu.dimension_semantics<parallel>, #tpu.dimension_semantics<arbitrary>], iteration_bounds = array<i64: 2, 3>, scalar_prefetch = 0 : i64, scratch_operands = 0 : i64, tpu.core_type = #tpu.core_type<tc>, window_params = [{transform_indices = @transform_0, window_bounds = array<i64: 1, 8, 32>}, {transform_indices = @transform_1, window_bounds = array<i64: 1, 32, 128>}, {transform_indices = @transform_2, window_bounds = array<i64: 1, 1, 128>}, {transform_indices = @transform_3, window_bounds = array<i64: 1, 1, 128>}, {transform_indices = @transform_4, window_bounds = array<i64: 1, 8, 1>}, {transform_indices = @transform_5, window_bounds = array<i64: 1, 8, 1>}, {transform_indices = @transform_6, window_bounds = array<i64: 1, 1, 128>}, {transform_indices = @transform_7, window_bounds = array<i64: 1, 1, 128>}]} {
    %c0 = arith.constant 0 : index
    %c0_0 = arith.constant 0 : index
    %c0_1 = arith.constant 0 : index
    %0 = vector.load %arg2[%c0, %c0_0, %c0_1] : memref<1x8x32xf32, #tpu.memory_space<vmem>>, vector<1x8x32xf32>
    %1 = vector.shape_cast %0 : vector<1x8x32xf32> to vector<8x32xf32>
    %c0_2 = arith.constant 0 : index
    %c0_3 = arith.constant 0 : index
    %c0_4 = arith.constant 0 : index
    %2 = vector.load %arg3[%c0_2, %c0_3, %c0_4] : memref<1x32x128xf32, #tpu.memory_space<vmem>>, vector<1x32x128xf32>
    %3 = vector.shape_cast %2 : vector<1x32x128xf32> to vector<32x128xf32>
    %4 = arith.truncf %1 : vector<8x32xf32> to vector<8x32xbf16>
    %5 = arith.truncf %3 : vector<32x128xf32> to vector<32x128xbf16>
    %cst = arith.constant dense<0.000000e+00> : vector<8x128xf32>
    %6 = tpu.matmul %4, %5, %cst {dimension_numbers = #tpu.dot_dimension_numbers<[1], [0], [0], [1], [0, 0, 1, 1], [], []>} : vector<8x32xbf16>, vector<32x128xbf16>, vector<8x128xf32> -> vector<8x128xf32>
    %cst_5 = arith.constant 1.000000e+00 : f32
    %7 = vector.broadcast %cst_5 : f32 to vector<8x128xf32>
    %8 = arith.mulf %6, %7 : vector<8x128xf32>
    %c8_i32 = arith.constant 8 : i32
    %9 = arith.muli %arg1, %c8_i32 : i32
    %10 = tpu.iota {dimensions = array<i32: 0>} : vector<8x128xi32>
    %11 = vector.broadcast %9 : i32 to vector<8x128xi32>
    %12 = arith.addi %11, %10 : vector<8x128xi32>
    %13 = tpu.iota {dimensions = array<i32: 1>} : vector<8x128xi32>
    %c20_i32 = arith.constant 20 : i32
    %14 = vector.broadcast %c20_i32 : i32 to vector<8x128xi32>
    %15 = arith.cmpi slt, %12, %14 : vector<8x128xi32>
    %c19_i32 = arith.constant 19 : i32
    %16 = vector.broadcast %c19_i32 : i32 to vector<8x128xi32>
    %17 = arith.cmpi slt, %13, %16 : vector<8x128xi32>
    %18 = arith.andi %15, %17 : vector<8x128xi1>
    %cst_6 = arith.constant -1.000000e+30 : f32
    %19 = vector.broadcast %cst_6 : f32 to vector<8x128xf32>
    %20 = arith.select %18, %8, %19 : vector<8x128xi1>, vector<8x128xf32>
    %cst_7 = arith.constant dense<0xFF800000> : vector<8xf32>
    %21 = vector.multi_reduction <maximumf>, %20, %cst_7 [1] : vector<8x128xf32> to vector<8xf32>
    %22 = vector.shape_cast %21 : vector<8xf32> to vector<8x1xf32>
    %23 = vector.broadcast %22 : vector<8x1xf32> to vector<8x128xf32>
    %24 = arith.subf %20, %23 : vector<8x128xf32>
    %25 = math.exp %24 : vector<8x128xf32>
    %cst_8 = arith.constant dense<0.000000e+00> : vector<8xf32>
    %26 = vector.multi_reduction <add>, %25, %cst_8 [1] : vector<8x128xf32> to vector<8xf32>
    %27 = vector.shape_cast %26 : vector<8xf32> to vector<8x1xf32>
    %28 = tpu.reciprocal %27 {approx = true} : vector<8x1xf32> -> vector<8x1xf32>
    %c0_9 = arith.constant 0 : index
    %c0_10 = arith.constant 0 : index
    %c0_11 = arith.constant 0 : index
    %29 = vector.load %arg4[%c0_9, %c0_10, %c0_11] : memref<1x1x128xf32, #tpu.memory_space<vmem>>, vector<1x1x128xf32>
    %30 = vector.shape_cast %29 : vector<1x1x128xf32> to vector<1x128xf32>
    %31 = vector.broadcast %30 : vector<1x128xf32> to vector<8x128xf32>
    %32 = arith.subf %20, %31 : vector<8x128xf32>
    %33 = math.exp %32 : vector<8x128xf32>
    %c0_12 = arith.constant 0 : index
    %c0_13 = arith.constant 0 : index
    %c0_14 = arith.constant 0 : index
    %34 = vector.load %arg5[%c0_12, %c0_13, %c0_14] : memref<1x1x128xf32, #tpu.memory_space<vmem>>, vector<1x1x128xf32>
    %35 = vector.shape_cast %34 : vector<1x1x128xf32> to vector<1x128xf32>
    %36 = tpu.reciprocal %35 {approx = true} : vector<1x128xf32> -> vector<1x128xf32>
    %37 = vector.broadcast %28 : vector<8x1xf32> to vector<8x128xf32>
    %38 = arith.mulf %25, %37 : vector<8x128xf32>
    %39 = vector.broadcast %36 : vector<1x128xf32> to vector<8x128xf32>
    %40 = arith.mulf %33, %39 : vector<8x128xf32>
    %41 = arith.mulf %38, %40 : vector<8x128xf32>
    %cst_15 = arith.constant -1.000000e+00 : f32
    %42 = vector.broadcast %cst_15 : f32 to vector<8x128xf32>
    %43 = arith.select %17, %41, %42 : vector<8x128xi1>, vector<8x128xf32>
    %cst_16 = arith.constant dense<0xFF800000> : vector<8xf32>
    %44 = vector.multi_reduction <maximumf>, %43, %cst_16 [1] : vector<8x128xf32> to vector<8xf32>
    %45 = vector.shape_cast %44 : vector<8xf32> to vector<8x1xf32>
    %46 = tpu.iota {dimensions = array<i32: 1>} : vector<8x128xi32>
    %47 = vector.broadcast %45 : vector<8x1xf32> to vector<8x128xf32>
    %48 = arith.cmpf oeq, %43, %47 : vector<8x128xf32>
    %c128_i32 = arith.constant 128 : i32
    %49 = vector.broadcast %c128_i32 : i32 to vector<8x128xi32>
    %50 = arith.select %48, %46, %49 : vector<8x128xi1>, vector<8x128xi32>
    %cst_17 = arith.constant dense<2147483647> : vector<8xi32>
    %51 = vector.multi_reduction <minsi>, %50, %cst_17 [1] : vector<8x128xi32> to vector<8xi32>
    %52 = vector.shape_cast %51 : vector<8xi32> to vector<8x1xi32>
    %c0_18 = arith.constant 0 : index
    %c0_19 = arith.constant 0 : index
    %c0_20 = arith.constant 0 : index
    %53 = vector.load %arg6[%c0_18, %c0_19, %c0_20] : memref<1x8x1xf32, #tpu.memory_space<vmem>>, vector<1x8x1xf32>
    %54 = vector.shape_cast %53 : vector<1x8x1xf32> to vector<8x1xf32>
    %55 = vector.shape_cast %45 : vector<8x1xf32> to vector<1x8x1xf32>
    tpu.vector_store %arg6[%c0_18, %c0_19, %c0_20], %55 {strides = array<i32>} : memref<1x8x1xf32, #tpu.memory_space<vmem>>, vector<1x8x1xf32>,
    %c0_21 = arith.constant 0 : index
    %c0_22 = arith.constant 0 : index
    %c0_23 = arith.constant 0 : index
    %56 = vector.load %arg7[%c0_21, %c0_22, %c0_23] : memref<1x8x1xi32, #tpu.memory_space<vmem>>, vector<1x8x1xi32>
    %57 = vector.shape_cast %56 : vector<1x8x1xi32> to vector<8x1xi32>
    %58 = vector.shape_cast %52 : vector<8x1xi32> to vector<1x8x1xi32>
    tpu.vector_store %arg7[%c0_21, %c0_22, %c0_23], %58 {strides = array<i32>} : memref<1x8x1xi32, #tpu.memory_space<vmem>>, vector<1x8x1xi32>,
    %cst_24 = arith.constant -1.000000e+00 : f32
    %59 = vector.broadcast %cst_24 : f32 to vector<8x128xf32>
    %60 = arith.select %15, %41, %59 : vector<8x128xi1>, vector<8x128xf32>
    %cst_25 = arith.constant dense<0xFF800000> : vector<128xf32>
    %61 = vector.multi_reduction <maximumf>, %60, %cst_25 [0] : vector<8x128xf32> to vector<128xf32>
    %62 = vector.shape_cast %61 : vector<128xf32> to vector<1x128xf32>
    %63 = tpu.iota {dimensions = array<i32: 0>} : vector<8x128xi32>
    %64 = vector.broadcast %62 : vector<1x128xf32> to vector<8x128xf32>
    %65 = arith.cmpf oeq, %60, %64 : vector<8x128xf32>
    %c8_i32_26 = arith.constant 8 : i32
    %66 = vector.broadcast %c8_i32_26 : i32 to vector<8x128xi32>
    %67 = arith.select %65, %63, %66 : vector<8x128xi1>, vector<8x128xi32>
    %cst_27 = arith.constant dense<2147483647> : vector<128xi32>
    %68 = vector.multi_reduction <minsi>, %67, %cst_27 [0] : vector<8x128xi32> to vector<128xi32>
    %69 = vector.shape_cast %68 : vector<128xi32> to vector<1x128xi32>
    %c8_i32_28 = arith.constant 8 : i32
    %70 = arith.muli %arg1, %c8_i32_28 : i32
    %71 = vector.broadcast %70 : i32 to vector<1x128xi32>
    %72 = arith.addi %69, %71 : vector<1x128xi32>
    %c0_i32 = arith.constant 0 : i32
    %73 = arith.cmpi eq, %arg1, %c0_i32 : i32
    %74 = arith.extui %73 : i1 to i32
    %c0_i32_29 = arith.constant 0 : i32
    %75 = arith.cmpi ne, %74, %c0_i32_29 : i32
    scf.if %75 {
      %c0_32 = arith.constant 0 : index
      %c0_33 = arith.constant 0 : index
      %c0_34 = arith.constant 0 : index
      %79 = vector.load %arg8[%c0_32, %c0_33, %c0_34] : memref<1x1x128xf32, #tpu.memory_space<vmem>>, vector<1x1x128xf32>
      %80 = vector.shape_cast %79 : vector<1x1x128xf32> to vector<1x128xf32>
      %81 = vector.shape_cast %62 : vector<1x128xf32> to vector<1x1x128xf32>
      tpu.vector_store %arg8[%c0_32, %c0_33, %c0_34], %81 {strides = array<i32>} : memref<1x1x128xf32, #tpu.memory_space<vmem>>, vector<1x1x128xf32>,
      %c0_35 = arith.constant 0 : index
      %c0_36 = arith.constant 0 : index
      %c0_37 = arith.constant 0 : index
      %82 = vector.load %arg9[%c0_35, %c0_36, %c0_37] : memref<1x1x128xi32, #tpu.memory_space<vmem>>, vector<1x1x128xi32>
      %83 = vector.shape_cast %82 : vector<1x1x128xi32> to vector<1x128xi32>
      %84 = vector.shape_cast %72 : vector<1x128xi32> to vector<1x1x128xi32>
      tpu.vector_store %arg9[%c0_35, %c0_36, %c0_37], %84 {strides = array<i32>} : memref<1x1x128xi32, #tpu.memory_space<vmem>>, vector<1x1x128xi32>,
    } else {
    }
    %c0_i32_30 = arith.constant 0 : i32
    %76 = arith.cmpi sgt, %arg1, %c0_i32_30 : i32
    %77 = arith.extui %76 : i1 to i32
    %c0_i32_31 = arith.constant 0 : i32
    %78 = arith.cmpi ne, %77, %c0_i32_31 : i32
    scf.if %78 {
      %c0_32 = arith.constant 0 : index
      %c0_33 = arith.constant 0 : index
      %c0_34 = arith.constant 0 : index
      %79 = vector.load %arg8[%c0_32, %c0_33, %c0_34] : memref<1x1x128xf32, #tpu.memory_space<vmem>>, vector<1x1x128xf32>
      %80 = vector.shape_cast %79 : vector<1x1x128xf32> to vector<1x128xf32>
      %c0_35 = arith.constant 0 : index
      %c0_36 = arith.constant 0 : index
      %c0_37 = arith.constant 0 : index
      %81 = vector.load %arg9[%c0_35, %c0_36, %c0_37] : memref<1x1x128xi32, #tpu.memory_space<vmem>>, vector<1x1x128xi32>
      %82 = vector.shape_cast %81 : vector<1x1x128xi32> to vector<1x128xi32>
      %83 = arith.cmpf ogt, %62, %80 : vector<1x128xf32>
      %84 = arith.select %83, %62, %80 : vector<1x128xi1>, vector<1x128xf32>
      %c0_38 = arith.constant 0 : index
      %c0_39 = arith.constant 0 : index
      %c0_40 = arith.constant 0 : index
      %85 = vector.load %arg8[%c0_38, %c0_39, %c0_40] : memref<1x1x128xf32, #tpu.memory_space<vmem>>, vector<1x1x128xf32>
      %86 = vector.shape_cast %85 : vector<1x1x128xf32> to vector<1x128xf32>
      %87 = vector.shape_cast %84 : vector<1x128xf32> to vector<1x1x128xf32>
      tpu.vector_store %arg8[%c0_38, %c0_39, %c0_40], %87 {strides = array<i32>} : memref<1x1x128xf32, #tpu.memory_space<vmem>>, vector<1x1x128xf32>,
      %88 = arith.select %83, %72, %82 : vector<1x128xi1>, vector<1x128xi32>
      %c0_41 = arith.constant 0 : index
      %c0_42 = arith.constant 0 : index
      %c0_43 = arith.constant 0 : index
      %89 = vector.load %arg9[%c0_41, %c0_42, %c0_43] : memref<1x1x128xi32, #tpu.memory_space<vmem>>, vector<1x1x128xi32>
      %90 = vector.shape_cast %89 : vector<1x1x128xi32> to vector<1x128xi32>
      %91 = vector.shape_cast %88 : vector<1x128xi32> to vector<1x1x128xi32>
      tpu.vector_store %arg9[%c0_41, %c0_42, %c0_43], %91 {strides = array<i32>} : memref<1x1x128xi32, #tpu.memory_space<vmem>>, vector<1x1x128xi32>,
    } else {
    }
    return
  }
  func.func @transform_0(%arg0: i32, %arg1: i32) -> (i32, i32, i32) {
    %c0_i32 = arith.constant 0 : i32
    %c0_i32_0 = arith.constant 0 : i32
    return %arg0, %arg1, %c0_i32 : i32, i32, i32
  }
  func.func @transform_1(%arg0: i32, %arg1: i32) -> (i32, i32, i32) {
    %c0_i32 = arith.constant 0 : i32
    %c0_i32_0 = arith.constant 0 : i32
    %c0_i32_1 = arith.constant 0 : i32
    return %arg0, %c0_i32, %c0_i32_0 : i32, i32, i32
  }
  func.func @transform_2(%arg0: i32, %arg1: i32) -> (i32, i32, i32) {
    %c0_i32 = arith.constant 0 : i32
    %c0_i32_0 = arith.constant 0 : i32
    %c0_i32_1 = arith.constant 0 : i32
    return %arg0, %c0_i32, %c0_i32_0 : i32, i32, i32
  }
  func.func @transform_3(%arg0: i32, %arg1: i32) -> (i32, i32, i32) {
    %c0_i32 = arith.constant 0 : i32
    %c0_i32_0 = arith.constant 0 : i32
    %c0_i32_1 = arith.constant 0 : i32
    return %arg0, %c0_i32, %c0_i32_0 : i32, i32, i32
  }
  func.func @transform_4(%arg0: i32, %arg1: i32) -> (i32, i32, i32) {
    %c0_i32 = arith.constant 0 : i32
    %c0_i32_0 = arith.constant 0 : i32
    return %arg0, %arg1, %c0_i32 : i32, i32, i32
  }
  func.func @transform_5(%arg0: i32, %arg1: i32) -> (i32, i32, i32) {
    %c0_i32 = arith.constant 0 : i32
    %c0_i32_0 = arith.constant 0 : i32
    return %arg0, %arg1, %c0_i32 : i32, i32, i32
  }
  func.func @transform_6(%arg0: i32, %arg1: i32) -> (i32, i32, i32) {
    %c0_i32 = arith.constant 0 : i32
    %c0_i32_0 = arith.constant 0 : i32
    %c0_i32_1 = arith.constant 0 : i32
    return %arg0, %c0_i32, %c0_i32_0 : i32, i32, i32
  }
  func.func @transform_7(%arg0: i32, %arg1: i32) -> (i32, i32, i32) {
    %c0_i32 = arith.constant 0 : i32
    %c0_i32_0 = arith.constant 0 : i32
    %c0_i32_1 = arith.constant 0 : i32
    return %arg0, %c0_i32, %c0_i32_0 : i32, i32, i32
  }
}

</mosaic_0001>

<bundles_post_ra>
// kernel: dual_softmax_matcher_pallas.2
= control target key start
LH: loop header
LB: loop body
LE: loop exit
PB: predicated region body
PF: predicated region fallthrough
CT: control target
= control target key end

     0   :  { %s555_s12 = smov 0   ;;  %s557_s13 = smov 0   ;;  %s628_s0 = inlined_call_operand.vmem [shape: f32[2,24,32], index: 0, kind: input, shape index: {}]   ;;  %s629_s1 = inlined_call_operand.vmem [shape: f32[2,32,128], index: 1, kind: input, shape index: {}]   ;;  %s630_s2 = inlined_call_operand.vmem [shape: f32[2,1,128], index: 2, kind: output, shape index: {0}]   ;;  %s631_s3 = inlined_call_operand.vmem [shape: f32[2,1,128], index: 3, kind: output, shape index: {1}]  }
   0x1   :  { %s559_s14 = smov 0   ;;  %s561_s15 = smov 0  }
   0x2   :  { %s563_s16 = smov 0  }
   0x3 LB: > { %s23_s17 = sadd.s32 1, %s521_s14  ;;  %s26_s18 = sadd.s32 1, %s525_s15  ;;  %s529_s16 = sphi %s563_s16, %s14_s16   ;;  %s525_s15 = sphi %s561_s15, %s635_s15   ;;  %s521_s14 = sphi %s559_s14, %s634_s14   ;;  %s517_s13 = sphi %s557_s13, %s633_s13   ;;  %s513_s12 = sphi %s555_s12, %s632_s12  }
   0x4   : > { %p24_p0 = scmp.ge.s32.totalorder %s23_s17, 3  ;;  %p421_p1 = scmp.ge.s32.totalorder %s529_s16, 1 }
   0x5   : > { %p167_p2 = scmp.lt.s32.totalorder %s529_s16, 7 }
   0x6   : > { %s637_s17 = smov (%p24_p0, %s23_s17), 0  ;;  %s639_s18 = smov (!%p24_p0, %s26_s18), %s525_s15 }
   0x7   : > { %p168_p3 = pnand %p421_p1, %p167_p2  ;;  %p28_p4 = scmp.ge.s32.totalorder %s639_s18, 2 }
   0x8   : > { %p200_p5 = scmp.lt.s32.totalorder (!%p168_p3), %s517_s13, 1  ;;  %p202_p6 = scmp.lt.s32.totalorder (!%p168_p3), %s513_s12, 2 }
   0x9   : > { %s641_s18 = smov (%p28_p4, %s639_s18), 0  ;;  %171 = sbr.rel (%p168_p3) target bundleno = 279 (0x117), region = 28 }
   0xa   : > { %s426_s9 = sshll.u32 (!%p168_p3), %s513_s12, 3  ;;  %p427_p7 = scmp.ne.s32.totalorder (!%p168_p3), %s513_s12, 0 }
   0xe   : > { %v531_v0 = vmov 0.0   ;;  %vm532_vm0 = vmmov 0   ;;  %s643_s13 = smov (!%p200_p5, %s517_s13), 1  ;;  %vm228_vm1 = vcmask 261120   ;;  %v273_v9 = vlaneseq }
   0xf   : > { %434 = vmatprep.subr.bf16.mxu0 %v531_v0  ;;  %438 = vmatprep.mubr.msk.bf16.mxu0 %vm532_vm0, %v531_v0  ;;  %s203_s19 = scalar_select %p202_p6, %s513_s12, 2  ;;  %v275_v11 = vstv %s426_s9 }
  0x10   : > { %s430_s20 = sshll.u32 %s643_s13, 5  ;;  %s592_s23 = scalar_lea.vmem %s630_s2, %s643_s13  ;;  %v274_v10 = vshrl.u32 %v273_v9, 7 }
  0x11   : > { %s212_s26 = scalar_lea.vmem %s629_s1, %s430_s20  ;;  %s600_s29 = scalar_lea.vmem %s631_s3, %s643_s13 }
  0x12   : > { %v223_v1 = vld [vmem:[%s212_s26 + $0x10] sm:$0xff]  ;;  %v224_v2 = vld [vmem:[%s212_s26 + $0x18] sm:$0xff]  ;;  %v221_v3 = vld [vmem:[%s212_s26] sm:$0xff]  ;;  %s442_s30 = smul.u32 3, %s643_s13  ;;  %v276_v12 = vadd.s32 %v275_v11, %v274_v10 }
  0x13   : > { %v227_v4 = vpack.c.bf16 %v224_v2, %v223_v1  ;;  %v222_v5 = vld [vmem:[%s212_s26 + $0x8] sm:$0xff] }
  0x14   : > { %s205_s4 = sadd.s32 %s442_s30, %s203_s19  ;;  %v226_v6 = vpack.c.bf16 %v222_v5, %v221_v3  ;;  %vm277_vm2 = vcmp.lt.s32.totalorder %v276_v12, 20 }
  0x15   : > { %435 = vmatpush3.bf16.msra.mxu0 %v227_v4  ;;  %s422_s5 = sshll.u32 %s205_s4, 3 }
  0x16   : > { %436 = vmatprep.subr.bf16.mxu0 %v531_v0  ;;  %s207_s8 = scalar_lea.vmem %s628_s0, %s422_s5 }
  0x17   : > { %v220_v7 = vld [vmem:[%s207_s8] sm:$0xff] }
  0x18   : > { %v225_v8 = vpack.c.bf16 %v220_v7, %v220_v7 }
  0x19   : > { %437 = vmatpush3.bf16.msra.mxu0 %v226_v6 }
  0x1c   : > { %439 = vmatmul.mubr.msk.bf16.vlgmr.msra.gmra.mxu0 %vm228_vm1, %v225_v8 }
  0xdc   : > { %v266_v13 = vpop.f32.mrf.mxu0 }
  0xdd   : > { %v278_v14 = vsel %vm277_vm2, %v266_v13, -1e+30 }
  0xde   : > { %v279_v15 = vrot.slane %v278_v14, 4  ;;  %v440_v16 = vpop.f32.mrf.mxu0 }
  0xe0   : > { %v280_v17 = vmax.f32 %v278_v14, %v279_v15  ;;  %v269_v18 = vpop.f32.mrf.mxu0 }
  0xe2   : > { %v281_v19 = vrot.slane %v280_v17, 2  ;;  %v441_v20 = vpop.f32.mrf.mxu0 }
  0xe4   : > { %v282_v21 = vmax.f32 %v280_v17, %v281_v19  ;;  %288 = sbr.rel (%p427_p7) target bundleno = 235 (0xeb), region = 32 }
  0xe6   : > { %v283_v22 = vrot.slane %v282_v21, 1 }
  0xe8   : > { %v284_v23 = vmax.f32 %v282_v21, %v283_v22 }
  0xe9   : > { %v533_v24 = vmov -1e+30   ;;  %v534_v25 = vmov 0.0  }
  0xea   : > { %289 = vst [vmem:[%s592_s23] sm:$0x1] %v533_v24  ;;  %290 = vst [vmem:[%s600_s29] sm:$0x1] %v534_v25 }
  0xeb PF: > { %v296_v27 = vsub.s32 0, %v274_v10 }
  0xf1   : > { %v291_v26 = vld [vmem:[%s592_s23] sm:$0x1] }
  0xf2   : > { %v292_v28 = vmax.f32 %v291_v26, %v284_v23  ;;  %v308_v39 = vld [vmem:[%s600_s29] sm:$0x1] }
  0xf4   : > { %v297_v29 = vrot.slane %v292_v28, %v296_v27  ;;  %315 = vst [vmem:[%s592_s23] sm:$0x1] %v292_v28  ;;  %v309_v32 = vsub.f32 %v291_v26, %v292_v28 }
  0xf6   : > { %v299_v30 = vsub.f32 %v278_v14, %v297_v29  ;;  %v310_v33 = vmul.f32 1.442695, %v309_v32 }
  0xf8   : > { %v300_v31 = vmul.f32 1.442695, %v299_v30 }
  0xfa   : > { %487 = vpow2.f32 %v300_v31 }
  0xfb   : > { %489 = vpow2.f32 %v310_v33 }
 0x107   : > { %v488_v34 = vpop.eup %487 }
 0x108   : > { %v302_v35 = vrot.slane %v488_v34, 4  ;;  %v490_v38 = vpop.eup %489 }
 0x109   : > { %v312_v42 = vmul.f32 %v490_v38, %v308_v39 }
 0x10a   : > { %v303_v36 = vadd.f32 %v488_v34, %v302_v35 }
 0x10c   : > { %v304_v37 = vrot.slane %v303_v36, 2 }
 0x10e   : > { %v305_v40 = vadd.f32 %v304_v37, %v303_v36 }
 0x110   : > { %v306_v41 = vrot.slane %v305_v40, 1 }
 0x112   : > { %v307_v43 = vadd.f32 %v306_v41, %v305_v40 }
 0x114   : > { %v313_v44 = vadd.f32 %v312_v42, %v307_v43 }
 0x116   : > { %314 = vst [vmem:[%s600_s29] sm:$0x1] %v313_v44 }
 0x117 PF: > { %s14_s16 = sadd.s32 1, %s529_s16   ;;  %s632_s12 = smov %s521_s14 }
 0x118   : > { %p11_p8 = scmp.ge.s32.totalorder %s14_s16, 8   ;;  %s633_s13 = smov %s525_s15 }
 0x119   : > { %s634_s14 = smov %s637_s17  ;;  %s635_s15 = smov %s641_s18 }
 0x11a   :  { %13 = sbr.rel (!%p11_p8) target bundleno = 3 (0x3), region = 77 }

// kernel: dual_softmax_matcher_pallas.3
= control target key start
LH: loop header
LB: loop body
LE: loop exit
PB: predicated region body
PF: predicated region fallthrough
CT: control target
= control target key end

     0   :  { %s1275_s0 = inlined_call_operand.vmem [shape: f32[2,24,32], index: 0, kind: input, shape index: {}]   ;;  %s1276_s1 = inlined_call_operand.vmem [shape: f32[2,32,128], index: 1, kind: input, shape index: {}]   ;;  %s1277_s2 = inlined_call_operand.vmem [shape: f32[2,1,128], index: 2, kind: input, shape index: {}]   ;;  %s1278_s3 = inlined_call_operand.vmem [shape: f32[2,1,128], index: 3, kind: input, shape index: {}]   ;;  %s1279_s4 = inlined_call_operand.vmem [shape: f32[2,24,1], index: 4, kind: output, shape index: {0}]   ;;  %s1280_s5 = inlined_call_operand.vmem [shape: s32[2,24,1], index: 5, kind: output, shape index: {1}]   ;;  %s1281_s6 = inlined_call_operand.hbm [shape: f32[2,1,128], index: 6, kind: output, shape index: {2}]   ;;  %s1282_s7 = inlined_call_operand.hbm [shape: s32[2,1,128], index: 7, kind: output, shape index: {3}]  }
   0x1   :  { %1286 = sst [smem:[#allocation11_spill]] %s1275_s0 }
   0x2   :  { %13 = vsyncpa [#allocation3], 0 }
   0x3   :  { %15 = vsyncpa [#allocation3 + $0x1], 0 }
   0x4   :  { %16 = vsyncpa [#allocation5], 0 }
   0x5   :  { %18 = vsyncpa [#allocation5 + $0x1], 0  ;;  %s1088_s24 = smov 0   ;;  %s1090_s25 = smov 0  }
   0x6   :  { %s1092_s26 = smov 0   ;;  %s1094_s27 = smov 0  }
   0x7   :  { %s1096_s28 = smov 0   ;;  %s1098_s29 = smov 0  }
   0x8   :  { %s1100_s30 = smov 0   ;;  %s1102_s8 = smov 0  }
   0x9 LB: > { %1287 = sst [smem:[#allocation8_spill]] %s1038_s30  ;;  %s802_s9 = sadd.s32 4294967295, %s1042_s8   ;;  %s1042_s8 = sphi %s1102_s8, %s24_s8   ;;  %s1038_s30 = sphi %s1100_s30, %s1296_s30   ;;  %s1034_s29 = sphi %s1098_s29, %s1301_s29   ;;  %s1030_s28 = sphi %s1096_s28, %s1294_s28   ;;  %s1026_s27 = sphi %s1094_s27, %s1300_s27   ;;  %s1022_s26 = sphi %s1092_s26, %s1299_s26   ;;  %s1018_s25 = sphi %s1090_s25, %s1298_s25   ;;  %s1014_s24 = sphi %s1088_s24, %s1297_s24  }
   0xa   : > { %s803_s10 = sadd.s32 4294967294, %s1042_s8   ;;  %s33_s11 = sadd.s32 1, %s1034_s29 }
   0xb   : > { %p34_p0 = scmp.ge.s32.totalorder %s33_s11, 3  ;;  %s36_s12 = sadd.s32 1, %s1038_s30 }
   0xc   : > { %p215_p1 = scmp.ne.s32.totalorder %s1022_s26, %s1018_s25  ;;  %p216_p2 = scmp.eq.s32.totalorder %s802_s9, 5 }
   0xd   : > { %s1303_s11 = smov (%p34_p0, %s33_s11), 0  ;;  %s1305_s12 = smov (!%p34_p0, %s36_s12), %s1038_s30 }
   0xe   : > { %1288 = sst [smem:[#allocation9_spill]] %s1303_s11  ;;  %p1137_p3 = por %p216_p2, %p215_p1 }
   0xf   : > { %p221_p4 = scmp.ne.s32.totalorder %s1018_s25, %s1014_s24  ;;  %p38_p5 = scmp.ge.s32.totalorder %s1305_s12, 2 }
  0x10   : > { %p222_p6 = scmp.eq.s32.totalorder %s803_s10, 5  ;;  %p806_p7 = scmp.ge.s32.totalorder %s1042_s8, 1 }
  0x11   : > { %p297_p8 = scmp.lt.s32.totalorder %s1042_s8, 7  ;;  %s1307_s12 = smov (%p38_p5, %s1305_s12), 0 }
  0x12   : > { %1290 = sst [smem:[#allocation10_spill]] %s1307_s12  ;;  %p1147_p9 = por %p222_p6, %p221_p4 }
  0x13   : > { %p298_p10 = pnand %p806_p7, %p297_p8  ;;  %s202_s15 = ssub.s32 %s1038_s30, %s1307_s12 }
  0x14   : > { %s205_s16 = sadd.s32 1, %s1022_s26  ;;  %p203_p11 = scmp.eq.s32.totalorder %s202_s15, 0 }
  0x15   : > { %301 = sbr.rel (%p298_p10) target bundleno = 1032 (0x408), region = 36  ;;  %s1158_s18 = sand.u32 (!%p298_p10), 1, %s1018_s25  }
  0x16   : > { %s1155_s17 = scalar_select %p203_p11, %s1022_s26, %s205_s16  }
  0x17   : > { %p362_p12 = scmp.lt.s32.totalorder (!%p298_p10), %s1030_s28, 1  ;;  %p364_p13 = scmp.lt.s32.totalorder (!%p298_p10), %s1026_s27, 2 }
  0x18   : > { %s1292_s0 = sld [smem:[#allocation11_spill]] (!%p298_p10)  ;;  %s355_s11 = scalar_lea.vmem (!%p298_p10), [#allocation2], %s1158_s18 }
  0x19   : > { %p815_p0 = scmp.ne.s32.totalorder (!%p298_p10), %s1026_s27, 0 }
  0x1a   : > { %v1044_v0 = vmov 0.0   ;;  %vm1045_vm0 = vmmov 0   ;;  %s1162_s19 = scalar_select %p362_p12, %s1030_s28, 1  ;;  %vm406_vm1 = vcmask 261120   ;;  %v451_v9 = vlaneseq }
  0x1b   : > { %825 = vmatprep.subr.bf16.mxu0 %v1044_v0  ;;  %829 = vmatprep.mubr.msk.bf16.mxu0 %vm1045_vm0, %v1044_v0  ;;  %s365_s10 = scalar_select %p364_p13, %s1026_s27, 2  ;;  %vm509_vm9 = vcmask 7168  }
  0x1c   : > { %s821_s20 = sshll.u32 %s1162_s19, 5  ;;  %s833_s21 = smul.u32 3, %s1162_s19  ;;  %v452_v10 = vshrl.u32 %v451_v9, 7  ;;  %v456_v13 = vand.u32 127, %v451_v9 }
  0x1d   : > { %s374_s9 = scalar_lea.vmem %s1276_s1, %s821_s20  ;;  %s813_s20 = sshll.u32 %s1026_s27, 3 }
  0x1e   : > { %v401_v1 = vld [vmem:[%s374_s9 + $0x10] sm:$0xff]  ;;  %v402_v2 = vld [vmem:[%s374_s9 + $0x18] sm:$0xff]  ;;  %v399_v3 = vld [vmem:[%s374_s9] sm:$0xff]  ;;  %s367_s15 = sadd.s32 %s833_s21, %s365_s10  ;;  %v453_v11 = vstv %s813_s20  ;;  %vm458_vm3 = vcmp.lt.s32.totalorder %v456_v13, 19  ;;  %s377_s12 = scalar_lea.vmem %s1277_s2, %s1162_s19  ;;  %v485_v28 = vsub.s32 0, %v452_v10 }
  0x1f   : > { %v405_v4 = vpack.c.bf16 %v402_v2, %v401_v1  ;;  %v400_v5 = vld [vmem:[%s374_s9 + $0x8] sm:$0xff]  ;;  %s1171_s16 = sshll.u32 %s367_s15, 3  ;;  %v454_v12 = vadd.s32 %v453_v11, %v452_v10  ;;  %v814_v23 = vld [vmem:[%s377_s12] ss:$0 sm:$0xff]  ;;  %s380_s23 = scalar_lea.vmem %s1278_s3, %s1162_s19 }
  0x20   : > { %v404_v6 = vpack.c.bf16 %v400_v5, %v399_v3  ;;  %s369_s30 = scalar_lea.vmem %s1292_s0, %s1171_s16  ;;  %v479_v25 = vld [vmem:[%s380_s23] sm:$0x1]  ;;  %s388_s10 = scalar_lea.vmem %s1279_s4, %s1171_s16 }
  0x21   : > { %826 = vmatpush3.bf16.msra.mxu0 %v405_v4  ;;  %v398_v7 = vld [vmem:[%s369_s30] sm:$0xff]  ;;  %vm457_vm2 = vcmp.lt.s32.totalorder %v454_v12, 20  ;;  %s396_s30 = scalar_lea.vmem %s1280_s5, %s1171_s16  ;;  %s1202_s12 = scalar_lea.vmem [#allocation4], %s1158_s18 }
  0x22   : > { %827 = vmatprep.subr.bf16.mxu0 %v1044_v0  ;;  %v403_v8 = vpack.c.bf16 %v398_v7, %v398_v7  ;;  %vm459_vm4 = vmand %vm457_vm2, %vm458_vm3 }
  0x25   : > { %828 = vmatpush3.bf16.msra.mxu0 %v404_v6 }
  0x28   : > { %830 = vmatmul.mubr.msk.bf16.vlgmr.msra.gmra.mxu0 %vm406_vm1, %v403_v8 }
  0xe8   : > { %v444_v14 = vpop.f32.mrf.mxu0 }
  0xe9   : > { %v460_v15 = vsel %vm459_vm4, %v444_v14, -1e+30 }
  0xea   : > { %461 = vmax.xlane.f32.xlu0 %v460_v15  ;;  %v831_v16 = vpop.f32.mrf.mxu0  ;;  %v476_v24 = vsub.f32 %v460_v15, %v814_v23 }
  0xec   : > { %v447_v17 = vpop.f32.mrf.mxu0  ;;  %v477_v26 = vmul.f32 1.442695, %v476_v24 }
  0xee   : > { %v832_v18 = vpop.f32.mrf.mxu0 }
 0x173   : > { %v462_v19 = vpop.xlane.xlu0 %461 }
 0x174   : > { %v463_v20 = vsub.f32 %v460_v15, %v462_v19 }
 0x176   : > { %v464_v21 = vmul.f32 1.442695, %v463_v20 }
 0x178   : > { %912 = vpow2.f32 %v464_v21 }
 0x179   : > { %914 = vrcp.f32 %v479_v25 }
 0x17a   : > { %916 = vpow2.f32 %v477_v26 }
 0x185   : > { %v913_v22 = vpop.eup %912 }
 0x186   : > { %466 = vadd.xlane.f32.xlu0 %v913_v22  ;;  %v915_v29 = vpop.eup %914 }
 0x187   : > { %v486_v30 = vrot.slane %v915_v29, %v485_v28  ;;  %v917_v31 = vpop.eup %916 }
 0x189   : > { %v488_v34 = vmul.f32 %v917_v31, %v486_v30 }
 0x20f   : > { %v467_v27 = vpop.xlane.xlu0 %466 }
 0x210   : > { %918 = vrcp.f32 %v467_v27 }
 0x21d   : > { %v919_v32 = vpop.eup %918 }
 0x21e   : > { %v481_v33 = vmul.f32 %v919_v32, %v913_v22 }
 0x220   : > { %v489_v35 = vmul.f32 %v488_v34, %v481_v33 }
 0x222   : > { %v490_v36 = vsel %vm458_vm3, %v489_v35, -1.0  ;;  %v512_v37 = vsel %vm457_vm2, %v489_v35, -1.0 }
 0x223   : > { %v513_v38 = vrot.slane %v512_v37, 4  ;;  %491 = vmax.xlane.f32.xlu1 %v490_v36 }
 0x225   : > { %v514_v39 = vmax.f32 %v512_v37, %v513_v38 }
 0x227   : > { %v515_v40 = vrot.slane %v514_v39, 2 }
 0x229   : > { %v516_v41 = vmax.f32 %v514_v39, %v515_v40 }
 0x22b   : > { %v517_v42 = vrot.slane %v516_v41, 1 }
 0x22d   : > { %v518_v43 = vmax.f32 %v516_v41, %v517_v42 }
 0x22f   : > { %vm519_vm5 = vcmp.eq.f32.partialorder %v512_v37, %v518_v43 }
 0x230   : > { %v520_v44 = vsel %vm519_vm5, %v452_v10, 8 }
 0x231   : > { %v521_v45 = vrot.slane %v520_v44, 4 }
 0x233   : > { %vm522_vm6 = vcmp.lt.s32.totalorder %v520_v44, %v521_v45 }
 0x234   : > { %v523_v46 = vsel %vm522_vm6, %v520_v44, %v521_v45 }
 0x235   : > { %v524_v47 = vrot.slane %v523_v46, 2 }
 0x237   : > { %vm525_vm7 = vcmp.lt.s32.totalorder %v523_v46, %v524_v47 }
 0x238   : > { %v526_v48 = vsel %vm525_vm7, %v523_v46, %v524_v47 }
 0x239   : > { %v527_v49 = vrot.slane %v526_v48, 1 }
 0x23b   : > { %vm528_vm8 = vcmp.lt.s32.totalorder %v526_v48, %v527_v49 }
 0x23c   : > { %v529_v50 = vsel %vm528_vm8, %v526_v48, %v527_v49 }
 0x23d   : > { %v530_v51 = vadd.s32 %v529_v50, %v453_v11 }
 0x2ac   : > { %v492_v52 = vpop.xlane.xlu1 %491 }
 0x2ad   : > { %vm493_vm10 = vcmp.eq.f32.partialorder %v490_v36, %v492_v52  ;;  %510 = vst.msk [vmem:[%s388_s10] sm:$0xff] %vm509_vm9, %v492_v52 }
 0x2ae   : > { %v494_v53 = vsel %vm493_vm10, %v456_v13, 128 }
 0x2af   : > { %v496_v54 = vshra.s32 %v494_v53, 16  ;;  %v495_v56 = vand.u32 65535, %v494_v53 }
 0x2b1   : > { %v498_v55 = vcvt.s32.f32 %v496_v54  ;;  %v497_v58 = vcvt.s32.f32 %v495_v56 }
 0x2b3   : > { %499 = vmin.xlane.f32.xlu1 %v498_v55 }
 0x33c   : > { %v500_v57 = vpop.xlane.xlu1 %499 }
 0x33d   : > { %vm501_vm11 = vcmp.eq.f32.partialorder %v498_v55, %v500_v57  ;;  %v506_v60 = vcvt.f32.s32 %v500_v57 }
 0x33e   : > { %v502_v59 = vsel %vm501_vm11, %v497_v58, inf }
 0x33f   : > { %503 = vmin.xlane.f32.xlu0 %v502_v59  ;;  %v507_v62 = vshll.u32 %v506_v60, 16 }
 0x3c8   : > { %v504_v61 = vpop.xlane.xlu0 %503 }
 0x3c9   : > { %v505_v63 = vcvt.f32.s32 %v504_v61  ;;  %534 = sbr.rel (%p815_p0) target bundleno = 975 (0x3cf), region = 40 }
 0x3cb   : > { %v508_v0 = vadd.s32 %v507_v62, %v505_v63 }
 0x3cd   : > { %511 = vst.msk [vmem:[%s396_s30] sm:$0xff] %vm509_vm9, %v508_v0 }
 0x3ce   : > { %535 = vst [vmem:[%s355_s11] sm:$0x1] %v518_v43  ;;  %536 = vst [vmem:[%s1202_s12] sm:$0x1] %v530_v51 }
 0x3cf PF: > { %p816_p1 = scmp.le.s32.totalorder %s1026_s27, 0 }
 0x3d1   : > { %540 = sbr.rel (%p816_p1) target bundleno = 986 (0x3da), region = 44 }
 0x3d6   : > { %v541_v1 = vld [vmem:[%s355_s11] sm:$0x1] }
 0x3d7   : > { %v542_v2 = vld [vmem:[%s1202_s12] sm:$0x1]  ;;  %vm543_vm12 = vcmp.gt.f32.partialorder %v518_v43, %v541_v1 }
 0x3d8   : > { %v544_v3 = vsel %vm543_vm12, %v518_v43, %v541_v1  ;;  %v546_v4 = vsel %vm543_vm12, %v530_v51, %v542_v2 }
 0x3d9   : > { %545 = vst [vmem:[%s355_s11] sm:$0x1] %v544_v3  ;;  %547 = vst [vmem:[%s1202_s12] sm:$0x1] %v546_v4 }
 0x3da PF: > { %s1285_s16 = sshll.u32 %s1030_s28, 4  ;;  %s587_s23 = sshll.u32 %s355_s11, 4  ;;  %s588_s23 = int_to_ptr.vmem [resolvable:$true] %s587_s23 }
 0x3db   : > { %s585_s27 = scalar_lea.hbm %s1281_s6, %s1285_s16  ;;  %s565_s19 = scalar_lea.sflag [#allocation3], %s1158_s18 }
 0x3dc   : > { %s920_s9 = scalar_lea.vmem %s588_s23, 16  ;;  %s1046_s10 = smov [#allocation2]  }
 0x3dd   : > { %p921_p2 = scmp.ne.s32.totalorder %s588_s23, %s920_s9  ;;  %s924_s15 = sshll.u32 %s1046_s10, 4  ;;  %s925_s15 = int_to_ptr.vmem [resolvable:$false] %s924_s15 }
 0x3de   : > { %s926_s20 = scalar_lea.vmem %s925_s15, 32  ;;  %p927_p6 = scmp.lt.s32.totalorder %s588_s23, %s925_s15 }
 0x3df   : > { %p922_p4 = pnand %p921_p2, %p1137_p3  ;;  %p928_p7 = scmp.lt.s32.totalorder %s926_s20, %s920_s9 }
 0x3e1   : > { %p923_p5 = pneg %p922_p4  ;;  %p929_p8 = por %p928_p7, %p927_p6 }
 0x3e3   : > { %p930_p10 = pnand %p929_p8, %p923_p5 }
 0x3e5   : > { %933 = shalt.err (!%p930_p10)
}
 0x3e6   : > { %s934_s30 = scalar_lea.hbm %s585_s27, 16  ;;  %s938_s22 = scalar_lea.hbm %s1281_s6, 32 }
 0x3e7   : > { %p935_p11 = scmp.ne.s32.totalorder %s585_s27, %s934_s30  ;;  %p939_p0 = scmp.lt.s32.totalorder %s585_s27, %s1281_s6 }
 0x3e8   : > { %p940_p1 = scmp.lt.s32.totalorder %s938_s22, %s934_s30 }
 0x3e9   : > { %p936_p12 = pnand %p935_p11, %p1137_p3 }
 0x3ea   : > { %p941_p2 = por %p940_p1, %p939_p0 }
 0x3eb   : > { %p937_p13 = pneg %p936_p12 }
 0x3ed   : > { %p942_p4 = pnand %p941_p2, %p937_p13 }
 0x3ef   : > { %945 = shalt.err (!%p942_p4)
}
 0x3f0   : > { %834 = dma.vmem_to_hbm [thread:$0]  (%p1137_p3), %s588_s23, 16, %s585_s27, %s565_s19  }
 0x3f1   : > { %s1293_s9 = sshll.u32 %s1030_s28, 4  ;;  %s600_s11 = sshll.u32 %s1202_s12, 4  ;;  %s601_s11 = int_to_ptr.vmem [resolvable:$true] %s600_s11 }
 0x3f2   : > { %s598_s20 = scalar_lea.hbm %s1282_s7, %s1293_s9  ;;  %s569_s0 = scalar_lea.sflag [#allocation5], %s1158_s18 }
 0x3f3   : > { %s946_s16 = scalar_lea.vmem %s601_s11, 16  ;;  %s1047_s30 = smov [#allocation4]  }
 0x3f4   : > { %p947_p5 = scmp.ne.s32.totalorder %s601_s11, %s946_s16  ;;  %s950_s21 = sshll.u32 %s1047_s30, 4  ;;  %s951_s21 = int_to_ptr.vmem [resolvable:$false] %s950_s21 }
 0x3f5   : > { %s952_s22 = scalar_lea.vmem %s951_s21, 32  ;;  %p953_p8 = scmp.lt.s32.totalorder %s601_s11, %s951_s21 }
 0x3f6   : > { %p948_p6 = pnand %p947_p5, %p1137_p3  ;;  %p954_p10 = scmp.lt.s32.totalorder %s952_s22, %s946_s16 }
 0x3f8   : > { %p949_p7 = pneg %p948_p6  ;;  %p955_p11 = por %p954_p10, %p953_p8 }
 0x3fa   : > { %p956_p12 = pnand %p955_p11, %p949_p7 }
 0x3fc   : > { %959 = shalt.err (!%p956_p12)
}
 0x3fd   : > { %s960_s28 = scalar_lea.hbm %s598_s20, 16  ;;  %s964_s27 = scalar_lea.hbm %s1282_s7, 32 }
 0x3fe   : > { %p961_p13 = scmp.ne.s32.totalorder %s598_s20, %s960_s28  ;;  %p965_p2 = scmp.lt.s32.totalorder %s598_s20, %s1282_s7 }
 0x3ff   : > { %p966_p4 = scmp.lt.s32.totalorder %s964_s27, %s960_s28 }
 0x400   : > { %p962_p0 = pnand %p961_p13, %p1137_p3 }
 0x401   : > { %p967_p5 = por %p966_p4, %p965_p2 }
 0x402   : > { %p963_p1 = pneg %p962_p0 }
 0x404   : > { %p968_p6 = pnand %p967_p5, %p963_p1 }
 0x406   : > { %971 = shalt.err (!%p968_p6)
}
 0x407   : > { %835 = dma.vmem_to_hbm [thread:$0]  (%p1137_p3), %s601_s11, 16, %s598_s20, %s569_s0  }
 0x408 PF: > { %p845_p7 = scmp.ge.s32.totalorder %s1042_s8, 2  ;;  %s634_s9 = sand.u32 1, %s1014_s24  }
 0x409   : > { %s635_s10 = scalar_lea.sflag [#allocation3], %s634_s9 }
 0x40a   : > { %p839_p8 = pnand %p845_p7, %p1147_p9 }
 0x40c   : > { %p840_p10 = pneg %p839_p8 }
 0x40e   : > { %1005 = dma.done.wait (%p840_p10), %s635_s10, 16  }
 0x40f   : > { %1007 = vsyncadd (%p840_p10), %s635_s10, 4294967280  ;;  %s643_s15 = scalar_lea.sflag [#allocation5], %s634_s9 }
 0x410   : > { %1009 = dma.done.wait (%p840_p10), %s643_s15, 16  }
 0x411   : > { %1011 = vsyncadd (%p840_p10), %s643_s15, 4294967280  ;;  %s24_s8 = sadd.s32 1, %s1042_s8   ;;  %s1294_s28 = sld [smem:[#allocation8_spill]] }
 0x412   : > { %p21_p11 = scmp.ge.s32.totalorder %s24_s8, 8   ;;  %s1295_s13 = sld [smem:[#allocation9_spill]] }
 0x413   : > { %s1296_s30 = sld [smem:[#allocation10_spill]]  ;;  %s1297_s24 = smov %s1018_s25 }
 0x414   : > { %s1298_s25 = smov %s1022_s26  ;;  %s1299_s26 = smov %s1155_s17 }
 0x415   : > { %s1300_s27 = smov %s1034_s29  ;;  %23 = sbr.rel (!%p21_p11) target bundleno = 9 (0x9), region = 129 }
 0x418   : > { %s1301_s29 = smov %s1295_s13 }
 0x41a   :  { %647 = vsyncpa [#allocation3], 1 }
 0x41b   :  { %649 = vsyncpa [#allocation3 + $0x1], 1 }
 0x41c   :  { %650 = vsyncpa [#allocation5], 1 }
 0x41d   :  { %652 = vsyncpa [#allocation5 + $0x1], 1 }

</bundles_post_ra>
